<compile_context>
chip_gen: v6e
topology: v6e:2x2x1
jax: 0.10.0
libtpu: 0.0.40
codegen_flags: <defaults>
</compile_context>

<pallas_src>
import jax
import jax.numpy as jnp
from jax.experimental import pallas as pl
from jax.experimental.pallas import tpu as pltpu

# ---- synthetic config (mirrors rospy params at small sizes) ----
N_RAYS = 64                                  # /Spatial_Attention/n_rays
NUM_SECTORS = 8                              # /Spatial_Attention/input_spatial_size
N_WAYPOINT = 2                               # /Training/n_waypoint
ACTION_DIM = 2

LIDAR_DIM = 2 * N_RAYS                       # 128
WP_DIM = 2 * N_WAYPOINT                      # 4
RAYS_PER_SECTOR = LIDAR_DIM // NUM_SECTORS   # 16
FEAT = RAYS_PER_SECTOR + WP_DIM              # 20 per-sector feature
H1 = 32                                      # spatial hidden
H2 = 32                                      # head hidden
NOISE_SIGMA = 0.1                            # GaussianNoise(action_dim) std

# ---- padded / folded dimensions ----
IN_PAD = 256                                 # lidar(128) + wp(4) padded to lane multiple of 128
H1_ALL = NUM_SECTORS * H1                    # 256 (all sectors concatenated on lanes)
OUT_PAD = 128                                # lane-dense head width (h2 and action padded)

# ---- packed parameter slab layout (row starts 8-aligned, all lane slices 128-aligned) ----
SLAB_COLS = 256
ROW_W1 = 0                                   # (256, 256) combined input weight (lidar block-diag + tiled wp)
ROW_B1 = 256                                 # (1, 256)   b1 tiled per sector
ROW_W2 = 264                                 # (256, 128) mean-pool folded W2, lanes 0..127
ROW_W3 = 264                                 # (128, 128) padded W3, lanes 128..255 (co-located with W2)
ROW_B2 = 520                                 # (1, 128)   lanes 0..127
ROW_B3 = 520                                 # (1, 128)   lanes 128..255
SLAB_ROWS = 528


def init_params(key):
    ks = jax.random.split(key, 6)
    scale = 0.1
    w1 = scale * jax.random.normal(ks[0], (FEAT, H1), jnp.float32)
    b1 = scale * jax.random.normal(ks[1], (H1,), jnp.float32)
    w2 = scale * jax.random.normal(ks[2], (H1, H2), jnp.float32)
    b2 = scale * jax.random.normal(ks[3], (H2,), jnp.float32)
    w3 = scale * jax.random.normal(ks[4], (H2, ACTION_DIM), jnp.float32)
    b3 = scale * jax.random.normal(ks[5], (ACTION_DIM,), jnp.float32)
    return (w1, b1, w2, b2, w3, b3)


def pack_params(params):
    """Pack all actor parameters into one padded (528, 256) f32 slab (done once, host side)."""
    w1, b1, w2, b2, w3, b3 = params
    w1_lidar = w1[:RAYS_PER_SECTOR]          # (16, 32)
    w1_wp = w1[RAYS_PER_SECTOR:]             # (4, 32)
    slab = jnp.zeros((SLAB_ROWS, SLAB_COLS), jnp.float32)
    # block-diagonal per-sector lidar weight: lanes [s*32:(s+1)*32] <- sector s hidden
    slab = slab.at[ROW_W1:ROW_W1 + LIDAR_DIM].set(
        jnp.kron(jnp.eye(NUM_SECTORS, dtype=jnp.float32), w1_lidar))
    # waypoint rows folded into the same weight block (input lanes 128..131)
    slab = slab.at[ROW_W1 + LIDAR_DIM:ROW_W1 + LIDAR_DIM + WP_DIM].set(
        jnp.tile(w1_wp, (1, NUM_SECTORS)))
    slab = slab.at[ROW_B1].set(jnp.tile(b1, NUM_SECTORS))
    # sector mean-pool folded into W2:  pooled @ W2 == h1_all @ (tile(W2, S)/S); lanes 0..31 live
    slab = slab.at[ROW_W2:ROW_W2 + H1_ALL, :H2].set(jnp.tile(w2, (NUM_SECTORS, 1)) / NUM_SECTORS)
    slab = slab.at[ROW_B2, :H2].set(b2)
    # lane-dense head: W3/b3 live in lanes 128..129 (rest of the 128 output lanes are zero)
    slab = slab.at[ROW_W3:ROW_W3 + H2, OUT_PAD:OUT_PAD + ACTION_DIM].set(w3)
    slab = slab.at[ROW_B3, OUT_PAD:OUT_PAD + ACTION_DIM].set(b3)
    return slab


def _actor_body(x_ref, params_ref, out_ref, noise_ref):
    # static, aligned slices of the resident parameter slab (zero runtime cost)
    w1 = params_ref[ROW_W1:ROW_W1 + IN_PAD, :]                     # (256, 256)
    b1 = params_ref[ROW_B1:ROW_B1 + 1, :]                          # (1, 256)
    w2 = params_ref[ROW_W2:ROW_W2 + H1_ALL, 0:OUT_PAD]             # (256, 128)
    b2 = params_ref[ROW_B2:ROW_B2 + 1, 0:OUT_PAD]                  # (1, 128)
    w3 = params_ref[ROW_W3:ROW_W3 + OUT_PAD, OUT_PAD:2 * OUT_PAD]  # (128, 128)
    b3 = params_ref[ROW_B3:ROW_B3 + 1, OUT_PAD:2 * OUT_PAD]        # (1, 128)

    x = x_ref[...]                                                 # (tb, 256) lidar+wp combined

    # per-sector MLP via block-diagonal weight (input_split folded into the math), K=256
    h1 = jnp.maximum(jnp.dot(x, w1, preferred_element_type=jnp.float32) + b1, 0.0)   # (tb, 256)
    # head MLP; sector mean-pool already folded into w2; lanes 32..127 stay exactly 0
    h2 = jnp.maximum(jnp.dot(h1, w2, preferred_element_type=jnp.float32) + b2, 0.0)  # (tb, 128)
    # lane-dense action: only lanes 0..1 are live, the rest are tanh(0) = 0
    a = jnp.tanh(jnp.dot(h2, w3, preferred_element_type=jnp.float32) + b3)           # (tb, 128)

    if noise_ref is not None:
        a = a + noise_ref[...]          # sigma-scaled gaussian noise in lanes 0..1, zeros elsewhere

    out_ref[...] = jnp.clip(a, -1.0, 1.0)


def _kernel_explore(x_ref, noise_ref, params_ref, out_ref):
    _actor_body(x_ref, params_ref, out_ref, noise_ref)


def _kernel_eval(x_ref, params_ref, out_ref):
    _actor_body(x_ref, params_ref, out_ref, None)


def _pick_tb(batch):
    b8 = ((batch + 7) // 8) * 8
    if b8 < 256:
        return b8          # single grid step: kernel is launch/DMA-latency bound at small B
    return 128             # >=2 "parallel" steps so both v7x TensorCores get work; MXU-friendly M


def _run(lidar, waypoints, param_slab, noise):
    """Pad batch, build the lane-dense combined input, invoke the Pallas kernel, slice result."""
    B = lidar.shape[0]
    tb = _pick_tb(B)
    n_tiles = pl.cdiv(B, tb)
    b_pad = n_tiles * tb

    # combined input: lanes 0..127 lidar, 128..131 waypoints, rest zero (one lane-dense DMA)
    x = jnp.zeros((b_pad, IN_PAD), jnp.float32)
    x = x.at[:B, :LIDAR_DIM].set(lidar.astype(jnp.float32))
    x = x.at[:B, LIDAR_DIM:LIDAR_DIM + WP_DIM].set(waypoints.astype(jnp.float32))

    in_arrays = [x]
    in_specs = [pl.BlockSpec((tb, IN_PAD), lambda i: (i, 0))]
    if noise is not None:
        noise_pad = jnp.zeros((b_pad, OUT_PAD), jnp.float32).at[:B, :ACTION_DIM].set(noise)
        in_arrays.append(noise_pad)
        in_specs.append(pl.BlockSpec((tb, OUT_PAD), lambda i: (i, 0)))
        kernel = _kernel_explore
    else:
        kernel = _kernel_eval
    in_arrays.append(param_slab)
    in_specs.append(pl.BlockSpec((SLAB_ROWS, SLAB_COLS), lambda i: (0, 0)))   # resident slab

    flops = 2 * b_pad * (IN_PAD * H1_ALL + H1_ALL * OUT_PAD + OUT_PAD * OUT_PAD)
    transcendentals = b_pad * OUT_PAD                                  # tanh at full lane width
    bytes_accessed = 4 * (b_pad * IN_PAD + SLAB_ROWS * SLAB_COLS + 2 * b_pad * OUT_PAD)

    out_pad = pl.pallas_call(
        kernel,
        out_shape=jax.ShapeDtypeStruct((b_pad, OUT_PAD), jnp.float32),
        grid_spec=pltpu.PrefetchScalarGridSpec(
            num_scalar_prefetch=0,
            grid=(n_tiles,),
            in_specs=in_specs,
            out_specs=pl.BlockSpec((tb, OUT_PAD), lambda i: (i, 0)),
        ),
        compiler_params=pltpu.CompilerParams(
            dimension_semantics=("parallel",)),
        cost_estimate=pl.CostEstimate(
            flops=flops, transcendentals=transcendentals, bytes_accessed=bytes_accessed),
    )(*in_arrays)

    return out_pad[:B, :ACTION_DIM]


@jax.jit
def actor_forward_eval(lidar, waypoints, param_slab):
    """add_noise=False path: deterministic actor + clamp."""
    return _run(lidar, waypoints, param_slab, None)


def make_explore_forward(noise_sigma):
    """add_noise=True path: actor + sigma-scaled gaussian noise + clamp."""
    @jax.jit
    def forward(key, lidar, waypoints, param_slab):
        noise = noise_sigma * jax.random.normal(key, (lidar.shape[0], ACTION_DIM), jnp.float32)
        return _run(lidar, waypoints, param_slab, noise)
    return forward


def actor_reference(lidar, waypoints, params):
    """Pure-JAX reference of the original (unfused) actor forward, no noise."""
    w1, b1, w2, b2, w3, b3 = params
    B = lidar.shape[0]
    lid = lidar.reshape(B, NUM_SECTORS, RAYS_PER_SECTOR)
    wp = jnp.broadcast_to(waypoints[:, None, :], (B, NUM_SECTORS, WP_DIM))
    x = jnp.concatenate([lid, wp], axis=-1)                          # (B, S, FEAT)  == input_split
    h1 = jax.nn.relu(jnp.einsum("bsf,fh->bsh", x, w1) + b1)
    pooled = h1.mean(axis=1)                                         # (B, H1)
    h2 = jax.nn.relu(pooled @ w2 + b2)
    a = jnp.tanh(h2 @ w3 + b3)
    return jnp.clip(a, -1.0, 1.0)


if __name__ == "__main__":
    key = jax.random.PRNGKey(0)
    k_lidar, k_wp, k_par, k_noise = jax.random.split(key, 4)

    B = 4                                                            # small batch (padded to 8 internally)
    lidar = jax.random.uniform(k_lidar, (B, LIDAR_DIM), jnp.float32)
    waypoints = jax.random.uniform(k_wp, (B, WP_DIM), jnp.float32)
    params = init_params(k_par)
    param_slab = pack_params(params)

    # 1) deterministic path (add_noise=False) checked against the pure-JAX reference
    out_det = actor_forward_eval(lidar, waypoints, param_slab)
    jax.block_until_ready(out_det)
    ref = actor_reference(lidar, waypoints, params)
    err = float(jnp.max(jnp.abs(out_det - ref)))
    assert err < 1e-4, f"mismatch vs reference: {err}"

    # 2) exploration path (add_noise=True): gaussian noise added in-kernel, then clamp to [-1, 1]
    fwd_explore = make_explore_forward(NOISE_SIGMA)
    actions = fwd_explore(k_noise, lidar, waypoints, param_slab)
    jax.block_until_ready(actions)

    assert actions.shape == (B, ACTION_DIM)
    assert bool(jnp.all(actions >= -1.0) & jnp.all(actions <= 1.0))
    print("KERNEL_OK")
</pallas_src>

<mosaic_0001>
module attributes {stable_mosaic.version = 11 : i64} {
  func.func @_kernel_eval(%arg0: i32, %arg1: memref<8x256xf32, #tpu.memory_space<vmem>>, %arg2: memref<528x256xf32, #tpu.memory_space<vmem>>, %arg3: memref<8x128xf32, #tpu.memory_space<vmem>>) attributes {dimension_semantics = [#tpu.dimension_semantics<parallel>], iteration_bounds = array<i64: 1>, scalar_prefetch = 0 : i64, scratch_operands = 0 : i64, tpu.core_type = #tpu.core_type<tc>, window_params = [{transform_indices = @transform_0, window_bounds = array<i64: 8, 256>}, {pipeline_mode = #tpu.pipeline_mode<synchronous>, transform_indices = @transform_1, window_bounds = array<i64: 528, 256>}, {transform_indices = @transform_2, window_bounds = array<i64: 8, 128>}]} {
    %c0 = arith.constant 0 : index
    %c0_0 = arith.constant 0 : index
    %0 = vector.load %arg2[%c0, %c0_0] : memref<528x256xf32, #tpu.memory_space<vmem>>, vector<256x256xf32>
    %c256 = arith.constant 256 : index
    %c0_1 = arith.constant 0 : index
    %1 = vector.load %arg2[%c256, %c0_1] : memref<528x256xf32, #tpu.memory_space<vmem>>, vector<1x256xf32>
    %c264 = arith.constant 264 : index
    %c0_2 = arith.constant 0 : index
    %2 = vector.load %arg2[%c264, %c0_2] : memref<528x256xf32, #tpu.memory_space<vmem>>, vector<256x128xf32>
    %c520 = arith.constant 520 : index
    %c0_3 = arith.constant 0 : index
    %3 = vector.load %arg2[%c520, %c0_3] : memref<528x256xf32, #tpu.memory_space<vmem>>, vector<1x128xf32>
    %c264_4 = arith.constant 264 : index
    %c128 = arith.constant 128 : index
    %4 = vector.load %arg2[%c264_4, %c128] : memref<528x256xf32, #tpu.memory_space<vmem>>, vector<128x128xf32>
    %c520_5 = arith.constant 520 : index
    %c128_6 = arith.constant 128 : index
    %5 = vector.load %arg2[%c520_5, %c128_6] : memref<528x256xf32, #tpu.memory_space<vmem>>, vector<1x128xf32>
    %c0_7 = arith.constant 0 : index
    %c0_8 = arith.constant 0 : index
    %6 = vector.load %arg1[%c0_7, %c0_8] : memref<8x256xf32, #tpu.memory_space<vmem>>, vector<8x256xf32>
    %cst = arith.constant dense<0.000000e+00> : vector<8x256xf32>
    %7 = tpu.matmul %6, %0, %cst {dimension_numbers = #tpu.dot_dimension_numbers<[1], [0], [0], [1], [0, 0, 1, 1], [], []>} : vector<8x256xf32>, vector<256x256xf32>, vector<8x256xf32> -> vector<8x256xf32>
    %8 = vector.broadcast %1 : vector<1x256xf32> to vector<8x256xf32>
    %9 = arith.addf %7, %8 : vector<8x256xf32>
    %cst_9 = arith.constant 0.000000e+00 : f32
    %10 = vector.broadcast %cst_9 : f32 to vector<8x256xf32>
    %11 = arith.maximumf %9, %10 : vector<8x256xf32>
    %cst_10 = arith.constant dense<0.000000e+00> : vector<8x128xf32>
    %12 = tpu.matmul %11, %2, %cst_10 {dimension_numbers = #tpu.dot_dimension_numbers<[1], [0], [0], [1], [0, 0, 1, 1], [], []>} : vector<8x256xf32>, vector<256x128xf32>, vector<8x128xf32> -> vector<8x128xf32>
    %13 = vector.broadcast %3 : vector<1x128xf32> to vector<8x128xf32>
    %14 = arith.addf %12, %13 : vector<8x128xf32>
    %cst_11 = arith.constant 0.000000e+00 : f32
    %15 = vector.broadcast %cst_11 : f32 to vector<8x128xf32>
    %16 = arith.maximumf %14, %15 : vector<8x128xf32>
    %cst_12 = arith.constant dense<0.000000e+00> : vector<8x128xf32>
    %17 = tpu.matmul %16, %4, %cst_12 {dimension_numbers = #tpu.dot_dimension_numbers<[1], [0], [0], [1], [0, 0, 1, 1], [], []>} : vector<8x128xf32>, vector<128x128xf32>, vector<8x128xf32> -> vector<8x128xf32>
    %18 = vector.broadcast %5 : vector<1x128xf32> to vector<8x128xf32>
    %19 = arith.addf %17, %18 : vector<8x128xf32>
    %20 = math.tanh %19 : vector<8x128xf32>
    %cst_13 = arith.constant -1.000000e+00 : f32
    %cst_14 = arith.constant 1.000000e+00 : f32
    %21 = vector.broadcast %cst_13 : f32 to vector<8x128xf32>
    %22 = arith.maximumf %21, %20 : vector<8x128xf32>
    %23 = vector.broadcast %cst_14 : f32 to vector<8x128xf32>
    %24 = arith.minimumf %23, %22 : vector<8x128xf32>
    %c0_15 = arith.constant 0 : index
    %c0_16 = arith.constant 0 : index
    %25 = vector.load %arg3[%c0_15, %c0_16] : memref<8x128xf32, #tpu.memory_space<vmem>>, vector<8x128xf32>
    tpu.vector_store %arg3[%c0_15, %c0_16], %24 {strides = array<i32>} : memref<8x128xf32, #tpu.memory_space<vmem>>, vector<8x128xf32>,
    return
  }
  func.func @transform_0(%arg0: i32) -> (i32, i32) {
    %c0_i32 = arith.constant 0 : i32
    %c0_i32_0 = arith.constant 0 : i32
    return %arg0, %c0_i32 : i32, i32
  }
  func.func @transform_1(%arg0: i32) -> (i32, i32) {
    %c0_i32 = arith.constant 0 : i32
    %c0_i32_0 = arith.constant 0 : i32
    %c0_i32_1 = arith.constant 0 : i32
    return %c0_i32, %c0_i32_0 : i32, i32
  }
  func.func @transform_2(%arg0: i32) -> (i32, i32) {
    %c0_i32 = arith.constant 0 : i32
    %c0_i32_0 = arith.constant 0 : i32
    return %arg0, %c0_i32 : i32, i32
  }
}

</mosaic_0001>

<bundles_post_ra>
// kernel: actor_forward_eval.1
= control target key start
LH: loop header
LB: loop body
LE: loop exit
PB: predicated region body
PF: predicated region fallthrough
CT: control target
= control target key end

     0   :  { %7 = vsyncpa [#allocation3], 0  ;;  %s494_s9 = smov [#allocation2]   ;;  %s543_s0 = inlined_call_operand.vmem [shape: f32[8,256], index: 0, kind: input, shape index: {}]   ;;  %s544_s1 = inlined_call_operand.hbm [shape: f32[528,256], index: 1, kind: input, shape index: {}]   ;;  %s545_s2 = inlined_call_operand.vmem [shape: f32[8,128], index: 2, kind: output, shape index: {}]  }
   0x1   :  { %s15_s10 = sshll.u32 %s494_s9, 4  ;;  %s16_s10 = int_to_ptr.vmem [resolvable:$true] %s15_s10 }
   0x2   :  { %s480_s11 = scalar_lea.vmem %s16_s10, 16896  ;;  %p485_p1 = scmp.lt.s32.totalorder %s16_s10, %s16_s10 }
   0x3   :  { %p481_p0 = scmp.ne.s32.totalorder %s16_s10, %s480_s11  ;;  %p486_p2 = scmp.lt.s32.totalorder %s480_s11, %s480_s11 }
   0x5   :  { %p487_p3 = por %p486_p2, %p485_p1 }
   0x7   :  { %p488_p4 = pnand %p487_p3, %p481_p0 }
   0x9   :  { %491 = shalt.err (!%p488_p4)
}
   0xa   :  { %s495_s12 = smov 256   ;;  %s496_s13 = smov 16  }
   0xb   :  { %21 = dma.hbm_to_vmem [thread:$0]  %s544_s1, 16896, %s16_s10, [#allocation3], %s495_s12, %s495_s12, %s496_s13  }
   0xc   :  { %492 = dma.done.wait [#allocation3], 16896  }
   0xd   :  { %493 = vsyncadd [#allocation3], 4294950400  ;;  %v56_v0 = vld [vmem:[#allocation2 + $0xf8] sm:$0xff]  ;;  %v55_v1 = vld [vmem:[#allocation2 + $0xf0] sm:$0xff]  ;;  %vm498_vm0 = vmmov 0  }
   0xe   :  { %v54_v2 = vld [vmem:[#allocation2 + $0xe8] sm:$0xff]  ;;  %154 = vmatprep.subr.mxu0 %v56_v0  ;;  %v53_v3 = vld [vmem:[#allocation2 + $0xe0] sm:$0xff]  ;;  %v52_v4 = vld [vmem:[#allocation2 + $0xd8] sm:$0xff] }
   0xf   :  { %155 = vmatpush1.msra.mxu0 %v55_v1  ;;  %v51_v5 = vld [vmem:[#allocation2 + $0xd0] sm:$0xff]  ;;  %v50_v6 = vld [vmem:[#allocation2 + $0xc8] sm:$0xff]  ;;  %v49_v7 = vld [vmem:[#allocation2 + $0xc0] sm:$0xff] }
  0x10   :  { %156 = vmatprep.subr.mxu0 %v54_v2  ;;  %v48_v8 = vld [vmem:[#allocation2 + $0xb8] sm:$0xff]  ;;  %v47_v9 = vld [vmem:[#allocation2 + $0xb0] sm:$0xff]  ;;  %v46_v10 = vld [vmem:[#allocation2 + $0xa8] sm:$0xff] }
  0x11   :  { %157 = vmatpush1.msra.mxu0 %v53_v3  ;;  %v45_v11 = vld [vmem:[#allocation2 + $0xa0] sm:$0xff]  ;;  %v44_v12 = vld [vmem:[#allocation2 + $0x98] sm:$0xff]  ;;  %v43_v13 = vld [vmem:[#allocation2 + $0x90] sm:$0xff] }
  0x12   :  { %158 = vmatprep.subr.mxu0 %v52_v4  ;;  %v42_v14 = vld [vmem:[#allocation2 + $0x88] sm:$0xff]  ;;  %v41_v15 = vld [vmem:[#allocation2 + $0x80] sm:$0xff]  ;;  %v40_v16 = vld [vmem:[#allocation2 + $0x78] sm:$0xff] }
  0x13   :  { %159 = vmatpush1.msra.mxu0 %v51_v5  ;;  %v39_v17 = vld [vmem:[#allocation2 + $0x70] sm:$0xff]  ;;  %v38_v18 = vld [vmem:[#allocation2 + $0x68] sm:$0xff]  ;;  %v37_v19 = vld [vmem:[#allocation2 + $0x60] sm:$0xff] }
  0x14   :  { %160 = vmatprep.subr.mxu0 %v50_v6  ;;  %v36_v20 = vld [vmem:[#allocation2 + $0x58] sm:$0xff]  ;;  %v35_v21 = vld [vmem:[#allocation2 + $0x50] sm:$0xff]  ;;  %v34_v22 = vld [vmem:[#allocation2 + $0x48] sm:$0xff] }
  0x15   :  { %161 = vmatpush1.msra.mxu0 %v49_v7  ;;  %v33_v23 = vld [vmem:[#allocation2 + $0x40] sm:$0xff]  ;;  %v32_v24 = vld [vmem:[#allocation2 + $0x38] sm:$0xff]  ;;  %v142_v25 = vld [vmem:[%s543_s0 + $0x8] sm:$0xff] }
  0x16   :  { %162 = vmatprep.subr.mxu0 %v48_v8  ;;  %218 = vmatprep.mubr.f32.mxu0 %v142_v25  ;;  %v122_v26 = vld [vmem:[#allocation2 + $0x400] sm:$0xff]  ;;  %v121_v28 = vld [vmem:[#allocation2 + $0x3f0] sm:$0xff]  ;;  %v30_v31 = vld [vmem:[#allocation2 + $0x28] sm:$0xff] }
  0x17   :  { %163 = vmatpush1.msra.mxu0 %v47_v9  ;;  %v106_v27 = vld [vmem:[#allocation2 + $0x300] sm:$0xff]  ;;  %v31_v29 = vld [vmem:[#allocation2 + $0x30] sm:$0xff]  ;;  %378 = vmatprep.subr.mxu1 %v122_v26  ;;  %v28_v35 = vld [vmem:[#allocation2 + $0x18] sm:$0xff] }
  0x18   :  { %164 = vmatprep.subr.mxu0 %v46_v10  ;;  %v105_v30 = vld [vmem:[#allocation2 + $0x2f0] sm:$0xff]  ;;  %379 = vmatpush3.msra.mxu1 %v106_v27  ;;  %v120_v32 = vld [vmem:[#allocation2 + $0x3e0] sm:$0xff]  ;;  %v26_v39 = vld [vmem:[#allocation2 + $0x8] sm:$0xff] }
  0x19   :  { %165 = vmatpush1.msra.mxu0 %v45_v11  ;;  %v29_v33 = vld [vmem:[#allocation2 + $0x20] sm:$0xff]  ;;  %380 = vmatprep.subr.mxu1 %v121_v28  ;;  %v119_v36 = vld [vmem:[#allocation2 + $0x3d0] sm:$0xff]  ;;  %v88_v43 = vld [vmem:[#allocation2 + $0x1f8] sm:$0xff] }
  0x1a   :  { %166 = vmatprep.subr.mxu0 %v44_v12  ;;  %v104_v34 = vld [vmem:[#allocation2 + $0x2e0] sm:$0xff]  ;;  %381 = vmatpush3.msra.mxu1 %v105_v30  ;;  %v27_v37 = vld [vmem:[#allocation2 + $0x10] sm:$0xff]  ;;  %v86_v47 = vld [vmem:[#allocation2 + $0x1e8] sm:$0xff] }
  0x1b   :  { %167 = vmatpush1.msra.mxu0 %v43_v13  ;;  %382 = vmatprep.subr.mxu1 %v120_v32  ;;  %v103_v38 = vld [vmem:[#allocation2 + $0x2d0] sm:$0xff]  ;;  %v118_v40 = vld [vmem:[#allocation2 + $0x3c0] sm:$0xff]  ;;  %v84_v51 = vld [vmem:[#allocation2 + $0x1d8] sm:$0xff] }
  0x1c   :  { %168 = vmatprep.subr.mxu0 %v42_v14  ;;  %383 = vmatpush3.msra.mxu1 %v104_v34  ;;  %v25_v41 = vld [vmem:[#allocation2] sm:$0xff]  ;;  %v117_v44 = vld [vmem:[#allocation2 + $0x3b0] sm:$0xff]  ;;  %v82_v55 = vld [vmem:[#allocation2 + $0x1c8] sm:$0xff]  ;;  %v497_v34 = vmov 0.0  }
  0x1d   :  { %169 = vmatpush1.msra.mxu0 %v41_v15  ;;  %384 = vmatprep.subr.mxu1 %v119_v36  ;;  %v102_v42 = vld [vmem:[#allocation2 + $0x2c0] sm:$0xff]  ;;  %v87_v45 = vld [vmem:[#allocation2 + $0x1f0] sm:$0xff]  ;;  %v80_v59 = vld [vmem:[#allocation2 + $0x1b8] sm:$0xff] }
  0x1e   :  { %170 = vmatprep.subr.mxu0 %v40_v16  ;;  %385 = vmatpush3.msra.mxu1 %v103_v38  ;;  %v101_v46 = vld [vmem:[#allocation2 + $0x2b0] sm:$0xff]  ;;  %v116_v48 = vld [vmem:[#allocation2 + $0x3a0] sm:$0xff]  ;;  %v78_v63 = vld [vmem:[#allocation2 + $0x1a8] sm:$0xff] }
  0x1f   :  { %171 = vmatpush1.msra.mxu0 %v39_v17  ;;  %386 = vmatprep.subr.mxu1 %v118_v40  ;;  %v85_v49 = vld [vmem:[#allocation2 + $0x1e0] sm:$0xff]  ;;  %v115_v52 = vld [vmem:[#allocation2 + $0x390] sm:$0xff]  ;;  %v76_v3 = vld [vmem:[#allocation2 + $0x198] sm:$0xff] }
  0x20   :  { %172 = vmatprep.subr.mxu0 %v38_v18  ;;  %387 = vmatpush3.msra.mxu1 %v102_v42  ;;  %v100_v50 = vld [vmem:[#allocation2 + $0x2a0] sm:$0xff]  ;;  %v83_v53 = vld [vmem:[#allocation2 + $0x1d0] sm:$0xff]  ;;  %v74_v7 = vld [vmem:[#allocation2 + $0x188] sm:$0xff] }
  0x21   :  { %173 = vmatpush1.msra.mxu0 %v37_v19  ;;  %388 = vmatprep.subr.mxu1 %v117_v44  ;;  %v99_v54 = vld [vmem:[#allocation2 + $0x290] sm:$0xff]  ;;  %v114_v56 = vld [vmem:[#allocation2 + $0x380] sm:$0xff]  ;;  %v72_v9 = vld [vmem:[#allocation2 + $0x178] sm:$0xff] }
  0x22   :  { %174 = vmatprep.subr.mxu0 %v36_v20  ;;  %389 = vmatpush3.msra.mxu1 %v101_v46  ;;  %v81_v57 = vld [vmem:[#allocation2 + $0x1c0] sm:$0xff]  ;;  %v113_v60 = vld [vmem:[#allocation2 + $0x370] sm:$0xff]  ;;  %v70_v11 = vld [vmem:[#allocation2 + $0x168] sm:$0xff] }
  0x23   :  { %175 = vmatpush1.msra.mxu0 %v35_v21  ;;  %390 = vmatprep.subr.mxu1 %v116_v48  ;;  %v98_v58 = vld [vmem:[#allocation2 + $0x280] sm:$0xff]  ;;  %v79_v61 = vld [vmem:[#allocation2 + $0x1b0] sm:$0xff]  ;;  %v68_v13 = vld [vmem:[#allocation2 + $0x158] sm:$0xff] }
  0x24   :  { %176 = vmatprep.subr.mxu0 %v34_v22  ;;  %391 = vmatpush3.msra.mxu1 %v100_v50  ;;  %v97_v62 = vld [vmem:[#allocation2 + $0x270] sm:$0xff]  ;;  %v112_v0 = vld [vmem:[#allocation2 + $0x360] sm:$0xff]  ;;  %v66_v15 = vld [vmem:[#allocation2 + $0x148] sm:$0xff] }
  0x25   :  { %177 = vmatpush1.msra.mxu0 %v33_v23  ;;  %392 = vmatprep.subr.mxu1 %v115_v52  ;;  %v77_v1 = vld [vmem:[#allocation2 + $0x1a0] sm:$0xff]  ;;  %v111_v4 = vld [vmem:[#allocation2 + $0x350] sm:$0xff]  ;;  %v64_v17 = vld [vmem:[#allocation2 + $0x138] sm:$0xff] }
  0x26   :  { %178 = vmatprep.subr.mxu0 %v32_v24  ;;  %393 = vmatpush3.msra.mxu1 %v99_v54  ;;  %v96_v2 = vld [vmem:[#allocation2 + $0x260] sm:$0xff]  ;;  %v75_v5 = vld [vmem:[#allocation2 + $0x190] sm:$0xff]  ;;  %v62_v19 = vld [vmem:[#allocation2 + $0x128] sm:$0xff] }
  0x27   :  { %179 = vmatpush1.msra.mxu0 %v31_v29  ;;  %394 = vmatprep.subr.mxu1 %v114_v56  ;;  %v95_v6 = vld [vmem:[#allocation2 + $0x250] sm:$0xff]  ;;  %v73_v8 = vld [vmem:[#allocation2 + $0x180] sm:$0xff]  ;;  %v60_v21 = vld [vmem:[#allocation2 + $0x118] sm:$0xff] }
  0x28   :  { %180 = vmatprep.subr.mxu0 %v30_v31  ;;  %395 = vmatpush3.msra.mxu1 %v98_v58  ;;  %v71_v10 = vld [vmem:[#allocation2 + $0x170] sm:$0xff]  ;;  %v69_v12 = vld [vmem:[#allocation2 + $0x160] sm:$0xff]  ;;  %v58_v23 = vld [vmem:[#allocation2 + $0x108] sm:$0xff] }
  0x29   :  { %181 = vmatpush1.msra.mxu0 %v29_v33  ;;  %396 = vmatprep.subr.mxu1 %v113_v60  ;;  %v67_v14 = vld [vmem:[#allocation2 + $0x150] sm:$0xff]  ;;  %v65_v16 = vld [vmem:[#allocation2 + $0x140] sm:$0xff]  ;;  %v139_v48 = vld [vmem:[#allocation2 + $0x308] sm:$0xff] }
  0x2a   :  { %182 = vmatprep.subr.mxu0 %v28_v35  ;;  %397 = vmatpush3.msra.mxu1 %v97_v62  ;;  %v63_v18 = vld [vmem:[#allocation2 + $0x130] sm:$0xff]  ;;  %v61_v20 = vld [vmem:[#allocation2 + $0x120] sm:$0xff]  ;;  %v144_v35 = vlaneseq  ;;  %v137_v50 = vld [vmem:[#allocation2 + $0x2e8] sm:$0xff] }
  0x2b   :  { %183 = vmatpush1.msra.mxu0 %v27_v37  ;;  %398 = vmatprep.subr.mxu1 %v112_v0  ;;  %v59_v22 = vld [vmem:[#allocation2 + $0x110] sm:$0xff]  ;;  %v57_v24 = vld [vmem:[#allocation2 + $0x100] sm:$0xff]  ;;  %v135_v52 = vld [vmem:[#allocation2 + $0x2c8] sm:$0xff] }
  0x2c   :  { %184 = vmatprep.subr.mxu0 %v26_v39  ;;  %399 = vmatpush3.msra.mxu1 %v96_v2  ;;  %v141_v25 = vld [vmem:[%s543_s0] sm:$0xff]  ;;  %v109_v28 = vld [vmem:[#allocation2 + $0x330] sm:$0xff]  ;;  %v145_v36 = vshrl.u32 %v144_v35, 7  ;;  %v133_v54 = vld [vmem:[#allocation2 + $0x2a8] sm:$0xff] }
  0x2d   :  { %185 = vmatpush1.msra.mxu0 %v25_v41  ;;  %400 = vmatprep.subr.mxu1 %v111_v4  ;;  %v110_v26 = vld [vmem:[#allocation2 + $0x340] sm:$0xff]  ;;  %v93_v29 = vld [vmem:[#allocation2 + $0x230] sm:$0xff]  ;;  %v131_v56 = vld [vmem:[#allocation2 + $0x288] sm:$0xff] }
  0x2e   :  { %186 = vmatprep.subr.mxu0 %v88_v43  ;;  %401 = vmatpush3.msra.mxu1 %v95_v6  ;;  %v94_v27 = vld [vmem:[#allocation2 + $0x240] sm:$0xff]  ;;  %v107_v32 = vld [vmem:[#allocation2 + $0x310] sm:$0xff]  ;;  %v146_v37 = vsub.s32 0, %v145_v36  ;;  %v150_v39 = vsub.s32 1, %v145_v36  ;;  %v129_v58 = vld [vmem:[#allocation2 + $0x268] sm:$0xff] }
  0x2f   :  { %187 = vmatpush2.msra.mxu0 %v87_v45  ;;  %402 = vmatprep.subr.mxu1 %v110_v26  ;;  %v108_v30 = vld [vmem:[#allocation2 + $0x320] sm:$0xff]  ;;  %v91_v33 = vld [vmem:[#allocation2 + $0x210] sm:$0xff]  ;;  %v127_v60 = vld [vmem:[#allocation2 + $0x248] sm:$0xff] }
  0x30   :  { %188 = vmatprep.subr.mxu0 %v86_v47  ;;  %403 = vmatpush3.msra.mxu1 %v94_v27  ;;  %v92_v31 = vld [vmem:[#allocation2 + $0x220] sm:$0xff]  ;;  %v125_v62 = vld [vmem:[#allocation2 + $0x228] sm:$0xff]  ;;  %v140_v6 = vld [vmem:[#allocation2 + $0x418] ss:$0 sm:$0xff] }
  0x31   :  { %189 = vmatpush2.msra.mxu0 %v85_v49  ;;  %404 = vmatprep.subr.mxu1 %v109_v28  ;;  %v90_v38 = vld [vmem:[#allocation2 + $0x200] ss:$8 sm:$0x3]  ;;  %v138_v49 = vld [vmem:[#allocation2 + $0x2f8] sm:$0xff] }
  0x32   :  { %190 = vmatprep.subr.mxu0 %v84_v51  ;;  %405 = vmatpush3.msra.mxu1 %v93_v29  ;;  %v147_v40 = vrot.slane %v90_v38, %v146_v37  ;;  %v151_v41 = vrot.slane %v90_v38, %v150_v39  ;;  %v136_v51 = vld [vmem:[#allocation2 + $0x2d8] sm:$0xff] }
  0x33   :  { %191 = vmatpush2.msra.mxu0 %v83_v53  ;;  %406 = vmatprep.subr.mxu1 %v108_v30  ;;  %v134_v53 = vld [vmem:[#allocation2 + $0x2b8] sm:$0xff] }
  0x34   :  { %192 = vmatprep.subr.mxu0 %v82_v55  ;;  %407 = vmatpush3.msra.mxu1 %v92_v31  ;;  %v132_v55 = vld [vmem:[#allocation2 + $0x298] sm:$0xff] }
  0x35   :  { %193 = vmatpush2.msra.mxu0 %v81_v57  ;;  %408 = vmatprep.subr.mxu1 %v107_v32  ;;  %v130_v57 = vld [vmem:[#allocation2 + $0x278] sm:$0xff] }
  0x36   :  { %194 = vmatprep.subr.mxu0 %v80_v59  ;;  %409 = vmatpush3.msra.mxu1 %v91_v33  ;;  %v128_v59 = vld [vmem:[#allocation2 + $0x258] sm:$0xff] }
  0x37   :  { %195 = vmatpush2.msra.mxu0 %v79_v61  ;;  %430 = vmatprep.subr.mxu1 %v497_v34  ;;  %v126_v61 = vld [vmem:[#allocation2 + $0x238] sm:$0xff] }
  0x38   :  { %196 = vmatprep.subr.mxu0 %v78_v63  ;;  %v124_v63 = vld [vmem:[#allocation2 + $0x218] sm:$0xff] }
  0x39   :  { %197 = vmatpush2.msra.mxu0 %v77_v1  ;;  %v123_v1 = vld [vmem:[#allocation2 + $0x410] ss:$0 sm:$0xff] }
  0x3a   :  { %198 = vmatprep.subr.mxu0 %v76_v3 }
  0x3b   :  { %199 = vmatpush2.msra.mxu0 %v75_v5 }
  0x3c   :  { %200 = vmatprep.subr.mxu0 %v74_v7 }
  0x3d   :  { %201 = vmatpush2.msra.mxu0 %v73_v8 }
  0x3e   :  { %202 = vmatprep.subr.mxu0 %v72_v9 }
  0x3f   :  { %203 = vmatpush2.msra.mxu0 %v71_v10 }
  0x40   :  { %204 = vmatprep.subr.mxu0 %v70_v11 }
  0x41   :  { %205 = vmatpush2.msra.mxu0 %v69_v12 }
  0x42   :  { %206 = vmatprep.subr.mxu0 %v68_v13 }
  0x43   :  { %207 = vmatpush2.msra.mxu0 %v67_v14 }
  0x44   :  { %208 = vmatprep.subr.mxu0 %v66_v15 }
  0x45   :  { %209 = vmatpush2.msra.mxu0 %v65_v16 }
  0x46   :  { %210 = vmatprep.subr.mxu0 %v64_v17 }
  0x47   :  { %211 = vmatpush2.msra.mxu0 %v63_v18 }
  0x48   :  { %212 = vmatprep.subr.mxu0 %v62_v19 }
  0x49   :  { %213 = vmatpush2.msra.mxu0 %v61_v20 }
  0x4a   :  { %214 = vmatprep.subr.mxu0 %v60_v21 }
  0x4b   :  { %215 = vmatpush2.msra.mxu0 %v59_v22 }
  0x4c   :  { %216 = vmatprep.subr.mxu0 %v58_v23 }
  0x4d   :  { %217 = vmatpush2.msra.mxu0 %v57_v24 }
  0x4e   :  { %219 = vmatmul.mubr.f32.vlgmr.msra.gmra.mxu0 %v141_v25 }
 0x10e   :  { %v220_v42 = vpop.f32.mrf.mxu0 }
 0x10f   :  { %v221_v43 = vadd.f32 %v220_v42, %v147_v40 }
 0x110   :  { %v222_v44 = vpop.f32.mrf.mxu0 }
 0x111   :  { %v223_v45 = vadd.f32 %v222_v44, %v151_v41  ;;  %v225_v47 = vmax.f32 %v221_v43, 0.0 }
 0x113   :  { %v226_v46 = vmax.f32 %v223_v45, 0.0 }
 0x115   :  { %291 = vmatprep.mubr.f32.mxu1 %v226_v46 }
 0x116   :  { %292 = vmatmul.mubr.f32.vlgmr.msra.gmra.mxu1 %v225_v47 }
 0x117   :  { %431 = vmatpush3.msra.mxu1 %v139_v48  ;;  %462 = vmatprep.mubr.msk.f32.mxu1 %vm498_vm0, %v497_v34 }
 0x118   :  { %432 = vmatprep.subr.mxu1 %v497_v34 }
 0x119   :  { %433 = vmatpush3.msra.mxu1 %v138_v49 }
 0x11a   :  { %434 = vmatprep.subr.mxu1 %v497_v34 }
 0x11b   :  { %435 = vmatpush3.msra.mxu1 %v137_v50 }
 0x11c   :  { %436 = vmatprep.subr.mxu1 %v497_v34 }
 0x11d   :  { %437 = vmatpush3.msra.mxu1 %v136_v51 }
 0x11e   :  { %438 = vmatprep.subr.mxu1 %v497_v34 }
 0x11f   :  { %439 = vmatpush3.msra.mxu1 %v135_v52 }
 0x120   :  { %440 = vmatprep.subr.mxu1 %v497_v34 }
 0x121   :  { %441 = vmatpush3.msra.mxu1 %v134_v53 }
 0x122   :  { %442 = vmatprep.subr.mxu1 %v497_v34 }
 0x123   :  { %443 = vmatpush3.msra.mxu1 %v133_v54 }
 0x124   :  { %444 = vmatprep.subr.mxu1 %v497_v34 }
 0x125   :  { %445 = vmatpush3.msra.mxu1 %v132_v55 }
 0x126   :  { %446 = vmatprep.subr.mxu1 %v497_v34 }
 0x127   :  { %447 = vmatpush3.msra.mxu1 %v131_v56 }
 0x128   :  { %448 = vmatprep.subr.mxu1 %v497_v34 }
 0x129   :  { %449 = vmatpush3.msra.mxu1 %v130_v57 }
 0x12a   :  { %450 = vmatprep.subr.mxu1 %v497_v34 }
 0x12b   :  { %451 = vmatpush3.msra.mxu1 %v129_v58 }
 0x12c   :  { %452 = vmatprep.subr.mxu1 %v497_v34 }
 0x12d   :  { %453 = vmatpush3.msra.mxu1 %v128_v59 }
 0x12e   :  { %454 = vmatprep.subr.mxu1 %v497_v34 }
 0x12f   :  { %455 = vmatpush3.msra.mxu1 %v127_v60 }
 0x130   :  { %456 = vmatprep.subr.mxu1 %v497_v34 }
 0x131   :  { %457 = vmatpush3.msra.mxu1 %v126_v61 }
 0x132   :  { %458 = vmatprep.subr.mxu1 %v497_v34 }
 0x133   :  { %459 = vmatpush3.msra.mxu1 %v125_v62 }
 0x134   :  { %460 = vmatprep.subr.mxu1 %v497_v34 }
 0x135   :  { %461 = vmatpush3.msra.mxu1 %v124_v63 }
 0x1d6   :  { %v410_v0 = vpop.f32.mrf.mxu1 }
 0x1d8   :  { %v411_v2 = vpop.f32.mrf.mxu1 }
 0x1d9   :  { %v412_v3 = vadd.f32 %v411_v2, %v410_v0 }
 0x1db   :  { %v294_v4 = vadd.f32 %v412_v3, %v123_v1 }
 0x1dd   :  { %v297_v5 = vmax.f32 %v294_v4, 0.0 }
 0x1df   :  { %463 = vmatmul.mubr.f32.vlgmr.msra.gmra.mxu1 %v297_v5 }
 0x29f   :  { %v364_v7 = vpop.f32.mrf.mxu1 }
 0x2a0   :  { %v365_v8 = vadd.f32 %v364_v7, %v140_v6 }
 0x2a1   :  { %v464_v9 = vpop.f32.mrf.mxu1 }
 0x2a2   :  { %470 = vtanh.f32 %v365_v8 }
 0x2af   :  { %v471_v10 = vpop.eup %470 }
 0x2b0   :  { %v377_v11 = vclamps-f32 %v471_v10, 1.0 }
 0x2b2   :  { %371 = vst [vmem:[%s545_s2] sm:$0xff] %v377_v11 }
 0x2b3   :  { %376 = vsyncpa [#allocation3], 1 }

</bundles_post_ra>
